<compile_context>
chip_gen: v6e
topology: v6e:2x2x1
jax: 0.10.0
libtpu: 0.0.40
codegen_flags: <defaults>
</compile_context>

<pallas_src>
import math
import functools

import jax
import jax.numpy as jnp
from jax import lax
from jax.experimental import pallas as pl
from jax.experimental.pallas import tpu as pltpu

_VMEM_LIMIT = 48 * 1024 * 1024   # explicit cap; leaves headroom on v7x (64 MiB phys)
_LN_EPS = 1e-12


def _pick_tile(dim, pref):
    """Largest tile <= pref that divides `dim` (power-of-two steps), else full dim."""
    if dim <= pref:
        return dim
    t = pref
    while t >= 8:
        if dim % t == 0:
            return t
        t //= 2
    return dim


# --------------------------------------------------------------------------- #
# Kernel 1: QKV projections, head-major outputs (B, NH, S, hd)
# --------------------------------------------------------------------------- #
def _qkv_proj_kernel(x_ref, wq_ref, bq_ref, wk_ref, bk_ref, wv_ref, bv_ref,
                     q_ref, k_ref, v_ref, *, num_heads, compute_dtype):
    # x_ref: (1, ts, H)  w*_ref: (NH, H, hd)  b*_ref: (NH, 1, hd)
    x = x_ref[0].astype(compute_dtype)
    for h in range(num_heads):
        q_ref[0, h] = (jnp.dot(x, wq_ref[h], preferred_element_type=jnp.float32)
                       + bq_ref[h]).astype(q_ref.dtype)
        k_ref[0, h] = (jnp.dot(x, wk_ref[h], preferred_element_type=jnp.float32)
                       + bk_ref[h]).astype(k_ref.dtype)
        v_ref[0, h] = (jnp.dot(x, wv_ref[h], preferred_element_type=jnp.float32)
                       + bv_ref[h]).astype(v_ref.dtype)


# --------------------------------------------------------------------------- #
# Kernel 2: per-(batch, head, q-tile) scaled dot-product attention
# --------------------------------------------------------------------------- #
def _attention_core_kernel(q_ref, k_ref, v_ref, mask_ref, ctx_ref, probs_ref=None,
                           *, sm_scale):
    q = q_ref[0, 0]          # (tq, hd)
    k = k_ref[0, 0]          # (S, hd)
    v = v_ref[0, 0]          # (S, hd)
    mask = mask_ref[0]       # (1, S) additive mask, broadcasts over query rows

    # q @ k^T without an explicit transpose: contract head_dim of both operands.
    scores = lax.dot_general(q, k, (((1,), (1,)), ((), ())),
                             preferred_element_type=jnp.float32)
    scores = scores * sm_scale + mask

    m = jnp.max(scores, axis=-1, keepdims=True)
    e = jnp.exp(scores - m)
    denom = jnp.sum(e, axis=-1, keepdims=True)
    probs = e * (1.0 / denom)           # one reciprocal per row, then multiply

    if probs_ref is not None:
        probs_ref[0, 0] = probs.astype(probs_ref.dtype)

    ctx = jnp.dot(probs.astype(v.dtype), v, preferred_element_type=jnp.float32)
    ctx_ref[0, 0] = ctx.astype(ctx_ref.dtype)


# --------------------------------------------------------------------------- #
# Kernel 3: output dense (per-head partial sums) + residual + LayerNorm
# --------------------------------------------------------------------------- #
def _output_kernel(ctx_ref, x_ref, wo_ref, bo_ref, gamma_ref, beta_ref, o_ref,
                   *, num_heads, eps):
    # ctx_ref: (1, NH, ts, hd)  x_ref: (1, ts, H)  wo_ref: (NH, hd, H)
    ts, H = x_ref.shape[1], x_ref.shape[2]
    x = x_ref[0]
    acc = jnp.zeros((ts, H), jnp.float32)
    for h in range(num_heads):
        acc = acc + jnp.dot(ctx_ref[0, h], wo_ref[h],
                            preferred_element_type=jnp.float32)
    y = acc + bo_ref[0] + x                       # dense + bias + residual
    u = jnp.mean(y, axis=-1, keepdims=True)
    d = y - u
    var = jnp.mean(d * d, axis=-1, keepdims=True)
    o_ref[0] = (gamma_ref[0] * (d * lax.rsqrt(var + eps)) + beta_ref[0]).astype(o_ref.dtype)


# --------------------------------------------------------------------------- #
# Wrapper
# --------------------------------------------------------------------------- #
def attention_forward(x, mask, params, num_heads, *,
                      compute_dtype=jnp.float32, return_probs=True,
                      seq_tile=256, q_tile=128):
    B, S, H = x.shape
    assert H % num_heads == 0
    hd = H // num_heads
    ts = _pick_tile(S, seq_tile)
    tq = _pick_tile(S, q_tile)

    # Wrapper-side weight plumbing (free layout work): split linear weights
    # ([in, out] == PyTorch W.T) into per-head slabs; optionally pre-cast to bf16.
    wq = params["wq"].reshape(H, num_heads, hd).transpose(1, 0, 2).astype(compute_dtype)
    wk = params["wk"].reshape(H, num_heads, hd).transpose(1, 0, 2).astype(compute_dtype)
    wv = params["wv"].reshape(H, num_heads, hd).transpose(1, 0, 2).astype(compute_dtype)
    bq = params["bq"].reshape(num_heads, 1, hd)
    bk = params["bk"].reshape(num_heads, 1, hd)
    bv = params["bv"].reshape(num_heads, 1, hd)
    wo = params["wo"].reshape(num_heads, hd, H).astype(compute_dtype)

    cparams2 = pltpu.CompilerParams(
        dimension_semantics=("parallel", "parallel"),
        vmem_limit_bytes=_VMEM_LIMIT)
    cparams3 = pltpu.CompilerParams(
        dimension_semantics=("parallel", "parallel", "parallel"),
        vmem_limit_bytes=_VMEM_LIMIT)

    # ---------------- stage 1: QKV projections ----------------
    head_shape = jax.ShapeDtypeStruct((B, num_heads, S, hd), compute_dtype)
    w_spec = pl.BlockSpec((num_heads, H, hd), lambda b, s: (0, 0, 0))
    b_spec = pl.BlockSpec((num_heads, 1, hd), lambda b, s: (0, 0, 0))
    qkv_out_spec = pl.BlockSpec((1, num_heads, ts, hd), lambda b, s: (b, 0, s, 0))

    q, k, v = pl.pallas_call(
        functools.partial(_qkv_proj_kernel, num_heads=num_heads,
                          compute_dtype=compute_dtype),
        grid=(B, S // ts),
        in_specs=[
            pl.BlockSpec((1, ts, H), lambda b, s: (b, s, 0)),
            w_spec, b_spec, w_spec, b_spec, w_spec, b_spec,
        ],
        out_specs=(qkv_out_spec, qkv_out_spec, qkv_out_spec),
        out_shape=(head_shape, head_shape, head_shape),
        compiler_params=cparams2,
    )(x, wq, bq, wk, bk, wv, bv)

    # ---------------- stage 2: attention core ----------------
    ctx_spec = pl.BlockSpec((1, 1, tq, hd), lambda b, h, qi: (b, h, qi, 0))
    ctx_shape = jax.ShapeDtypeStruct((B, num_heads, S, hd), compute_dtype)
    attn_in_specs = [
        pl.BlockSpec((1, 1, tq, hd), lambda b, h, qi: (b, h, qi, 0)),   # Q tile
        pl.BlockSpec((1, 1, S, hd), lambda b, h, qi: (b, h, 0, 0)),     # full K (per head)
        pl.BlockSpec((1, 1, S, hd), lambda b, h, qi: (b, h, 0, 0)),     # full V (per head)
        pl.BlockSpec((1, 1, S), lambda b, h, qi: (b, 0, 0)),            # additive mask
    ]
    attn_kernel = functools.partial(_attention_core_kernel,
                                    sm_scale=1.0 / math.sqrt(hd))

    if return_probs:
        probs_spec = pl.BlockSpec((1, 1, tq, S), lambda b, h, qi: (b, h, qi, 0))
        probs_shape = jax.ShapeDtypeStruct((B, num_heads, S, S), jnp.float32)
        ctx, probs = pl.pallas_call(
            attn_kernel,
            grid=(B, num_heads, S // tq),
            in_specs=attn_in_specs,
            out_specs=(ctx_spec, probs_spec),
            out_shape=(ctx_shape, probs_shape),
            compiler_params=cparams3,
        )(q, k, v, mask)
    else:
        # Dominant HBM write (B,NH,S,S) skipped entirely when probs aren't needed.
        ctx = pl.pallas_call(
            attn_kernel,
            grid=(B, num_heads, S // tq),
            in_specs=attn_in_specs,
            out_specs=ctx_spec,
            out_shape=ctx_shape,
            compiler_params=cparams3,
        )(q, k, v, mask)
        probs = None

    # ---------------- stage 3: output dense + residual + LayerNorm ----------------
    out = pl.pallas_call(
        functools.partial(_output_kernel, num_heads=num_heads, eps=_LN_EPS),
        grid=(B, S // ts),
        in_specs=[
            pl.BlockSpec((1, num_heads, ts, hd), lambda b, s: (b, 0, s, 0)),  # ctx
            pl.BlockSpec((1, ts, H), lambda b, s: (b, s, 0)),                 # residual x
            pl.BlockSpec((num_heads, hd, H), lambda b, s: (0, 0, 0)),         # Wo (per head)
            pl.BlockSpec((1, H), lambda b, s: (0, 0)),                        # bo
            pl.BlockSpec((1, H), lambda b, s: (0, 0)),                        # gamma
            pl.BlockSpec((1, H), lambda b, s: (0, 0)),                        # beta
        ],
        out_specs=pl.BlockSpec((1, ts, H), lambda b, s: (b, s, 0)),
        out_shape=jax.ShapeDtypeStruct((B, S, H), jnp.float32),
        compiler_params=cparams2,
    )(ctx, x, wo, params["bo"], params["gamma"], params["beta"])

    return out, probs


# --------------------------------------------------------------------------- #
# Pure-JAX reference (replica of the PyTorch forward) for verification
# --------------------------------------------------------------------------- #
def reference_forward(x, mask, params, num_heads):
    B, S, H = x.shape
    hd = H // num_heads

    def lin(t, w, b):
        return t @ w + b[0]

    q = lin(x, params["wq"], params["bq"]).reshape(B, S, num_heads, hd).transpose(0, 2, 1, 3)
    k = lin(x, params["wk"], params["bk"]).reshape(B, S, num_heads, hd).transpose(0, 2, 1, 3)
    v = lin(x, params["wv"], params["bv"]).reshape(B, S, num_heads, hd).transpose(0, 2, 1, 3)

    sc = jnp.einsum("bhqd,bhkd->bhqk", q, k) / math.sqrt(hd)
    sc = sc + mask[:, None, :, :]
    probs = jax.nn.softmax(sc, axis=-1)
    ctx = jnp.einsum("bhqk,bhkd->bhqd", probs, v).transpose(0, 2, 1, 3).reshape(B, S, H)

    dense = lin(ctx, params["wo"], params["bo"])
    y = dense + x
    u = y.mean(-1, keepdims=True)
    s = ((y - u) ** 2).mean(-1, keepdims=True)
    out = params["gamma"][0] * (y - u) / jnp.sqrt(s + _LN_EPS) + params["beta"][0]
    return out, probs


if __name__ == "__main__":
    B, S, H, NH = 2, 8, 32, 4

    key = jax.random.PRNGKey(0)
    ks = jax.random.split(key, 12)
    scale = 0.05
    params = {
        "wq": scale * jax.random.normal(ks[0], (H, H), jnp.float32),
        "bq": scale * jax.random.normal(ks[1], (1, H), jnp.float32),
        "wk": scale * jax.random.normal(ks[2], (H, H), jnp.float32),
        "bk": scale * jax.random.normal(ks[3], (1, H), jnp.float32),
        "wv": scale * jax.random.normal(ks[4], (H, H), jnp.float32),
        "bv": scale * jax.random.normal(ks[5], (1, H), jnp.float32),
        "wo": scale * jax.random.normal(ks[6], (H, H), jnp.float32),
        "bo": scale * jax.random.normal(ks[7], (1, H), jnp.float32),
        "gamma": jnp.ones((1, H), jnp.float32),
        "beta": jnp.zeros((1, H), jnp.float32),
    }

    x = jax.random.normal(ks[8], (B, S, H), jnp.float32)
    # additive attention mask: 0 = attend, -10000 = masked (BERT convention)
    mask = jnp.where(jax.random.uniform(ks[9], (B, 1, S)) > 0.2, 0.0, -10000.0).astype(jnp.float32)

    # f32 path with attention_probs output (exact module semantics)
    out, probs = attention_forward(x, mask, params, NH)
    out, probs = jax.block_until_ready((out, probs))

    ref_out, ref_probs = reference_forward(x, mask, params, NH)
    assert out.shape == (B, S, H) and probs.shape == (B, NH, S, S)
    assert jnp.allclose(out, ref_out, atol=1e-4, rtol=1e-4)
    assert jnp.allclose(probs, ref_probs, atol=1e-5, rtol=1e-5)

    # bf16 MXU-input path (recommended production config on v6e/v7x), probs skipped.
    out_bf16, probs_none = attention_forward(x, mask, params, NH,
                                             compute_dtype=jnp.bfloat16,
                                             return_probs=False)
    out_bf16 = jax.block_until_ready(out_bf16)
    assert probs_none is None
    assert out_bf16.shape == (B, S, H)
    assert jnp.allclose(out_bf16, ref_out, atol=5e-2, rtol=5e-2)

    print("KERNEL_OK")
</pallas_src>

<mosaic_0001>
module attributes {stable_mosaic.version = 11 : i64} {
  func.func @_qkv_proj_kernel(%arg0: i32, %arg1: i32, %arg2: memref<1x8x32xf32, #tpu.memory_space<vmem>>, %arg3: memref<4x32x8xf32, #tpu.memory_space<vmem>>, %arg4: memref<4x1x8xf32, #tpu.memory_space<vmem>>, %arg5: memref<4x32x8xf32, #tpu.memory_space<vmem>>, %arg6: memref<4x1x8xf32, #tpu.memory_space<vmem>>, %arg7: memref<4x32x8xf32, #tpu.memory_space<vmem>>, %arg8: memref<4x1x8xf32, #tpu.memory_space<vmem>>, %arg9: memref<1x4x8x8xf32, #tpu.memory_space<vmem>>, %arg10: memref<1x4x8x8xf32, #tpu.memory_space<vmem>>, %arg11: memref<1x4x8x8xf32, #tpu.memory_space<vmem>>) attributes {dimension_semantics = [#tpu.dimension_semantics<parallel>, #tpu.dimension_semantics<parallel>], iteration_bounds = array<i64: 2, 1>, scalar_prefetch = 0 : i64, scratch_operands = 0 : i64, tpu.core_type = #tpu.core_type<tc>, window_params = [{transform_indices = @transform_0, window_bounds = array<i64: 1, 8, 32>}, {pipeline_mode = #tpu.pipeline_mode<synchronous>, transform_indices = @transform_1, window_bounds = array<i64: 4, 32, 8>}, {pipeline_mode = #tpu.pipeline_mode<synchronous>, transform_indices = @transform_2, window_bounds = array<i64: 4, 1, 8>}, {pipeline_mode = #tpu.pipeline_mode<synchronous>, transform_indices = @transform_3, window_bounds = array<i64: 4, 32, 8>}, {pipeline_mode = #tpu.pipeline_mode<synchronous>, transform_indices = @transform_4, window_bounds = array<i64: 4, 1, 8>}, {pipeline_mode = #tpu.pipeline_mode<synchronous>, transform_indices = @transform_5, window_bounds = array<i64: 4, 32, 8>}, {pipeline_mode = #tpu.pipeline_mode<synchronous>, transform_indices = @transform_6, window_bounds = array<i64: 4, 1, 8>}, {transform_indices = @transform_7, window_bounds = array<i64: 1, 4, 8, 8>}, {transform_indices = @transform_8, window_bounds = array<i64: 1, 4, 8, 8>}, {transform_indices = @transform_9, window_bounds = array<i64: 1, 4, 8, 8>}]} {
    %c0 = arith.constant 0 : index
    %c0_0 = arith.constant 0 : index
    %c0_1 = arith.constant 0 : index
    %0 = vector.load %arg2[%c0, %c0_0, %c0_1] : memref<1x8x32xf32, #tpu.memory_space<vmem>>, vector<1x8x32xf32>
    %1 = vector.shape_cast %0 : vector<1x8x32xf32> to vector<8x32xf32>
    %c0_2 = arith.constant 0 : index
    %c0_3 = arith.constant 0 : index
    %c0_4 = arith.constant 0 : index
    %2 = vector.load %arg3[%c0_2, %c0_3, %c0_4] : memref<4x32x8xf32, #tpu.memory_space<vmem>>, vector<1x32x8xf32>
    %3 = vector.shape_cast %2 : vector<1x32x8xf32> to vector<32x8xf32>
    %cst = arith.constant dense<0.000000e+00> : vector<8x8xf32>
    %4 = tpu.matmul %1, %3, %cst {dimension_numbers = #tpu.dot_dimension_numbers<[1], [0], [0], [1], [0, 0, 1, 1], [], []>} : vector<8x32xf32>, vector<32x8xf32>, vector<8x8xf32> -> vector<8x8xf32>
    %c0_5 = arith.constant 0 : index
    %c0_6 = arith.constant 0 : index
    %c0_7 = arith.constant 0 : index
    %5 = vector.load %arg4[%c0_5, %c0_6, %c0_7] : memref<4x1x8xf32, #tpu.memory_space<vmem>>, vector<1x1x8xf32>
    %6 = vector.shape_cast %5 : vector<1x1x8xf32> to vector<1x8xf32>
    %7 = vector.broadcast %6 : vector<1x8xf32> to vector<8x8xf32>
    %8 = arith.addf %4, %7 : vector<8x8xf32>
    %c0_8 = arith.constant 0 : index
    %c0_9 = arith.constant 0 : index
    %c0_10 = arith.constant 0 : index
    %c0_11 = arith.constant 0 : index
    %9 = vector.load %arg9[%c0_8, %c0_9, %c0_10, %c0_11] : memref<1x4x8x8xf32, #tpu.memory_space<vmem>>, vector<1x1x8x8xf32>
    %10 = vector.shape_cast %9 : vector<1x1x8x8xf32> to vector<8x8xf32>
    %11 = vector.shape_cast %8 : vector<8x8xf32> to vector<1x1x8x8xf32>
    tpu.vector_store %arg9[%c0_8, %c0_9, %c0_10, %c0_11], %11 {strides = array<i32>} : memref<1x4x8x8xf32, #tpu.memory_space<vmem>>, vector<1x1x8x8xf32>,
    %c0_12 = arith.constant 0 : index
    %c0_13 = arith.constant 0 : index
    %c0_14 = arith.constant 0 : index
    %12 = vector.load %arg5[%c0_12, %c0_13, %c0_14] : memref<4x32x8xf32, #tpu.memory_space<vmem>>, vector<1x32x8xf32>
    %13 = vector.shape_cast %12 : vector<1x32x8xf32> to vector<32x8xf32>
    %cst_15 = arith.constant dense<0.000000e+00> : vector<8x8xf32>
    %14 = tpu.matmul %1, %13, %cst_15 {dimension_numbers = #tpu.dot_dimension_numbers<[1], [0], [0], [1], [0, 0, 1, 1], [], []>} : vector<8x32xf32>, vector<32x8xf32>, vector<8x8xf32> -> vector<8x8xf32>
    %c0_16 = arith.constant 0 : index
    %c0_17 = arith.constant 0 : index
    %c0_18 = arith.constant 0 : index
    %15 = vector.load %arg6[%c0_16, %c0_17, %c0_18] : memref<4x1x8xf32, #tpu.memory_space<vmem>>, vector<1x1x8xf32>
    %16 = vector.shape_cast %15 : vector<1x1x8xf32> to vector<1x8xf32>
    %17 = vector.broadcast %16 : vector<1x8xf32> to vector<8x8xf32>
    %18 = arith.addf %14, %17 : vector<8x8xf32>
    %c0_19 = arith.constant 0 : index
    %c0_20 = arith.constant 0 : index
    %c0_21 = arith.constant 0 : index
    %c0_22 = arith.constant 0 : index
    %19 = vector.load %arg10[%c0_19, %c0_20, %c0_21, %c0_22] : memref<1x4x8x8xf32, #tpu.memory_space<vmem>>, vector<1x1x8x8xf32>
    %20 = vector.shape_cast %19 : vector<1x1x8x8xf32> to vector<8x8xf32>
    %21 = vector.shape_cast %18 : vector<8x8xf32> to vector<1x1x8x8xf32>
    tpu.vector_store %arg10[%c0_19, %c0_20, %c0_21, %c0_22], %21 {strides = array<i32>} : memref<1x4x8x8xf32, #tpu.memory_space<vmem>>, vector<1x1x8x8xf32>,
    %c0_23 = arith.constant 0 : index
    %c0_24 = arith.constant 0 : index
    %c0_25 = arith.constant 0 : index
    %22 = vector.load %arg7[%c0_23, %c0_24, %c0_25] : memref<4x32x8xf32, #tpu.memory_space<vmem>>, vector<1x32x8xf32>
    %23 = vector.shape_cast %22 : vector<1x32x8xf32> to vector<32x8xf32>
    %cst_26 = arith.constant dense<0.000000e+00> : vector<8x8xf32>
    %24 = tpu.matmul %1, %23, %cst_26 {dimension_numbers = #tpu.dot_dimension_numbers<[1], [0], [0], [1], [0, 0, 1, 1], [], []>} : vector<8x32xf32>, vector<32x8xf32>, vector<8x8xf32> -> vector<8x8xf32>
    %c0_27 = arith.constant 0 : index
    %c0_28 = arith.constant 0 : index
    %c0_29 = arith.constant 0 : index
    %25 = vector.load %arg8[%c0_27, %c0_28, %c0_29] : memref<4x1x8xf32, #tpu.memory_space<vmem>>, vector<1x1x8xf32>
    %26 = vector.shape_cast %25 : vector<1x1x8xf32> to vector<1x8xf32>
    %27 = vector.broadcast %26 : vector<1x8xf32> to vector<8x8xf32>
    %28 = arith.addf %24, %27 : vector<8x8xf32>
    %c0_30 = arith.constant 0 : index
    %c0_31 = arith.constant 0 : index
    %c0_32 = arith.constant 0 : index
    %c0_33 = arith.constant 0 : index
    %29 = vector.load %arg11[%c0_30, %c0_31, %c0_32, %c0_33] : memref<1x4x8x8xf32, #tpu.memory_space<vmem>>, vector<1x1x8x8xf32>
    %30 = vector.shape_cast %29 : vector<1x1x8x8xf32> to vector<8x8xf32>
    %31 = vector.shape_cast %28 : vector<8x8xf32> to vector<1x1x8x8xf32>
    tpu.vector_store %arg11[%c0_30, %c0_31, %c0_32, %c0_33], %31 {strides = array<i32>} : memref<1x4x8x8xf32, #tpu.memory_space<vmem>>, vector<1x1x8x8xf32>,
    %c1 = arith.constant 1 : index
    %c0_34 = arith.constant 0 : index
    %c0_35 = arith.constant 0 : index
    %32 = vector.load %arg3[%c1, %c0_34, %c0_35] : memref<4x32x8xf32, #tpu.memory_space<vmem>>, vector<1x32x8xf32>
    %33 = vector.shape_cast %32 : vector<1x32x8xf32> to vector<32x8xf32>
    %cst_36 = arith.constant dense<0.000000e+00> : vector<8x8xf32>
    %34 = tpu.matmul %1, %33, %cst_36 {dimension_numbers = #tpu.dot_dimension_numbers<[1], [0], [0], [1], [0, 0, 1, 1], [], []>} : vector<8x32xf32>, vector<32x8xf32>, vector<8x8xf32> -> vector<8x8xf32>
    %c1_37 = arith.constant 1 : index
    %c0_38 = arith.constant 0 : index
    %c0_39 = arith.constant 0 : index
    %35 = vector.load %arg4[%c1_37, %c0_38, %c0_39] : memref<4x1x8xf32, #tpu.memory_space<vmem>>, vector<1x1x8xf32>
    %36 = vector.shape_cast %35 : vector<1x1x8xf32> to vector<1x8xf32>
    %37 = vector.broadcast %36 : vector<1x8xf32> to vector<8x8xf32>
    %38 = arith.addf %34, %37 : vector<8x8xf32>
    %c0_40 = arith.constant 0 : index
    %c1_41 = arith.constant 1 : index
    %c0_42 = arith.constant 0 : index
    %c0_43 = arith.constant 0 : index
    %39 = vector.load %arg9[%c0_40, %c1_41, %c0_42, %c0_43] : memref<1x4x8x8xf32, #tpu.memory_space<vmem>>, vector<1x1x8x8xf32>
    %40 = vector.shape_cast %39 : vector<1x1x8x8xf32> to vector<8x8xf32>
    %41 = vector.shape_cast %38 : vector<8x8xf32> to vector<1x1x8x8xf32>
    tpu.vector_store %arg9[%c0_40, %c1_41, %c0_42, %c0_43], %41 {strides = array<i32>} : memref<1x4x8x8xf32, #tpu.memory_space<vmem>>, vector<1x1x8x8xf32>,
    %c1_44 = arith.constant 1 : index
    %c0_45 = arith.constant 0 : index
    %c0_46 = arith.constant 0 : index
    %42 = vector.load %arg5[%c1_44, %c0_45, %c0_46] : memref<4x32x8xf32, #tpu.memory_space<vmem>>, vector<1x32x8xf32>
    %43 = vector.shape_cast %42 : vector<1x32x8xf32> to vector<32x8xf32>
    %cst_47 = arith.constant dense<0.000000e+00> : vector<8x8xf32>
    %44 = tpu.matmul %1, %43, %cst_47 {dimension_numbers = #tpu.dot_dimension_numbers<[1], [0], [0], [1], [0, 0, 1, 1], [], []>} : vector<8x32xf32>, vector<32x8xf32>, vector<8x8xf32> -> vector<8x8xf32>
    %c1_48 = arith.constant 1 : index
    %c0_49 = arith.constant 0 : index
    %c0_50 = arith.constant 0 : index
    %45 = vector.load %arg6[%c1_48, %c0_49, %c0_50] : memref<4x1x8xf32, #tpu.memory_space<vmem>>, vector<1x1x8xf32>
    %46 = vector.shape_cast %45 : vector<1x1x8xf32> to vector<1x8xf32>
    %47 = vector.broadcast %46 : vector<1x8xf32> to vector<8x8xf32>
    %48 = arith.addf %44, %47 : vector<8x8xf32>
    %c0_51 = arith.constant 0 : index
    %c1_52 = arith.constant 1 : index
    %c0_53 = arith.constant 0 : index
    %c0_54 = arith.constant 0 : index
    %49 = vector.load %arg10[%c0_51, %c1_52, %c0_53, %c0_54] : memref<1x4x8x8xf32, #tpu.memory_space<vmem>>, vector<1x1x8x8xf32>
    %50 = vector.shape_cast %49 : vector<1x1x8x8xf32> to vector<8x8xf32>
    %51 = vector.shape_cast %48 : vector<8x8xf32> to vector<1x1x8x8xf32>
    tpu.vector_store %arg10[%c0_51, %c1_52, %c0_53, %c0_54], %51 {strides = array<i32>} : memref<1x4x8x8xf32, #tpu.memory_space<vmem>>, vector<1x1x8x8xf32>,
    %c1_55 = arith.constant 1 : index
    %c0_56 = arith.constant 0 : index
    %c0_57 = arith.constant 0 : index
    %52 = vector.load %arg7[%c1_55, %c0_56, %c0_57] : memref<4x32x8xf32, #tpu.memory_space<vmem>>, vector<1x32x8xf32>
    %53 = vector.shape_cast %52 : vector<1x32x8xf32> to vector<32x8xf32>
    %cst_58 = arith.constant dense<0.000000e+00> : vector<8x8xf32>
    %54 = tpu.matmul %1, %53, %cst_58 {dimension_numbers = #tpu.dot_dimension_numbers<[1], [0], [0], [1], [0, 0, 1, 1], [], []>} : vector<8x32xf32>, vector<32x8xf32>, vector<8x8xf32> -> vector<8x8xf32>
    %c1_59 = arith.constant 1 : index
    %c0_60 = arith.constant 0 : index
    %c0_61 = arith.constant 0 : index
    %55 = vector.load %arg8[%c1_59, %c0_60, %c0_61] : memref<4x1x8xf32, #tpu.memory_space<vmem>>, vector<1x1x8xf32>
    %56 = vector.shape_cast %55 : vector<1x1x8xf32> to vector<1x8xf32>
    %57 = vector.broadcast %56 : vector<1x8xf32> to vector<8x8xf32>
    %58 = arith.addf %54, %57 : vector<8x8xf32>
    %c0_62 = arith.constant 0 : index
    %c1_63 = arith.constant 1 : index
    %c0_64 = arith.constant 0 : index
    %c0_65 = arith.constant 0 : index
    %59 = vector.load %arg11[%c0_62, %c1_63, %c0_64, %c0_65] : memref<1x4x8x8xf32, #tpu.memory_space<vmem>>, vector<1x1x8x8xf32>
    %60 = vector.shape_cast %59 : vector<1x1x8x8xf32> to vector<8x8xf32>
    %61 = vector.shape_cast %58 : vector<8x8xf32> to vector<1x1x8x8xf32>
    tpu.vector_store %arg11[%c0_62, %c1_63, %c0_64, %c0_65], %61 {strides = array<i32>} : memref<1x4x8x8xf32, #tpu.memory_space<vmem>>, vector<1x1x8x8xf32>,
    %c2 = arith.constant 2 : index
    %c0_66 = arith.constant 0 : index
    %c0_67 = arith.constant 0 : index
    %62 = vector.load %arg3[%c2, %c0_66, %c0_67] : memref<4x32x8xf32, #tpu.memory_space<vmem>>, vector<1x32x8xf32>
    %63 = vector.shape_cast %62 : vector<1x32x8xf32> to vector<32x8xf32>
    %cst_68 = arith.constant dense<0.000000e+00> : vector<8x8xf32>
    %64 = tpu.matmul %1, %63, %cst_68 {dimension_numbers = #tpu.dot_dimension_numbers<[1], [0], [0], [1], [0, 0, 1, 1], [], []>} : vector<8x32xf32>, vector<32x8xf32>, vector<8x8xf32> -> vector<8x8xf32>
    %c2_69 = arith.constant 2 : index
    %c0_70 = arith.constant 0 : index
    %c0_71 = arith.constant 0 : index
    %65 = vector.load %arg4[%c2_69, %c0_70, %c0_71] : memref<4x1x8xf32, #tpu.memory_space<vmem>>, vector<1x1x8xf32>
    %66 = vector.shape_cast %65 : vector<1x1x8xf32> to vector<1x8xf32>
    %67 = vector.broadcast %66 : vector<1x8xf32> to vector<8x8xf32>
    %68 = arith.addf %64, %67 : vector<8x8xf32>
    %c0_72 = arith.constant 0 : index
    %c2_73 = arith.constant 2 : index
    %c0_74 = arith.constant 0 : index
    %c0_75 = arith.constant 0 : index
    %69 = vector.load %arg9[%c0_72, %c2_73, %c0_74, %c0_75] : memref<1x4x8x8xf32, #tpu.memory_space<vmem>>, vector<1x1x8x8xf32>
    %70 = vector.shape_cast %69 : vector<1x1x8x8xf32> to vector<8x8xf32>
    %71 = vector.shape_cast %68 : vector<8x8xf32> to vector<1x1x8x8xf32>
    tpu.vector_store %arg9[%c0_72, %c2_73, %c0_74, %c0_75], %71 {strides = array<i32>} : memref<1x4x8x8xf32, #tpu.memory_space<vmem>>, vector<1x1x8x8xf32>,
    %c2_76 = arith.constant 2 : index
    %c0_77 = arith.constant 0 : index
    %c0_78 = arith.constant 0 : index
    %72 = vector.load %arg5[%c2_76, %c0_77, %c0_78] : memref<4x32x8xf32, #tpu.memory_space<vmem>>, vector<1x32x8xf32>
    %73 = vector.shape_cast %72 : vector<1x32x8xf32> to vector<32x8xf32>
    %cst_79 = arith.constant dense<0.000000e+00> : vector<8x8xf32>
    %74 = tpu.matmul %1, %73, %cst_79 {dimension_numbers = #tpu.dot_dimension_numbers<[1], [0], [0], [1], [0, 0, 1, 1], [], []>} : vector<8x32xf32>, vector<32x8xf32>, vector<8x8xf32> -> vector<8x8xf32>
    %c2_80 = arith.constant 2 : index
    %c0_81 = arith.constant 0 : index
    %c0_82 = arith.constant 0 : index
    %75 = vector.load %arg6[%c2_80, %c0_81, %c0_82] : memref<4x1x8xf32, #tpu.memory_space<vmem>>, vector<1x1x8xf32>
    %76 = vector.shape_cast %75 : vector<1x1x8xf32> to vector<1x8xf32>
    %77 = vector.broadcast %76 : vector<1x8xf32> to vector<8x8xf32>
    %78 = arith.addf %74, %77 : vector<8x8xf32>
    %c0_83 = arith.constant 0 : index
    %c2_84 = arith.constant 2 : index
    %c0_85 = arith.constant 0 : index
    %c0_86 = arith.constant 0 : index
    %79 = vector.load %arg10[%c0_83, %c2_84, %c0_85, %c0_86] : memref<1x4x8x8xf32, #tpu.memory_space<vmem>>, vector<1x1x8x8xf32>
    %80 = vector.shape_cast %79 : vector<1x1x8x8xf32> to vector<8x8xf32>
    %81 = vector.shape_cast %78 : vector<8x8xf32> to vector<1x1x8x8xf32>
    tpu.vector_store %arg10[%c0_83, %c2_84, %c0_85, %c0_86], %81 {strides = array<i32>} : memref<1x4x8x8xf32, #tpu.memory_space<vmem>>, vector<1x1x8x8xf32>,
    %c2_87 = arith.constant 2 : index
    %c0_88 = arith.constant 0 : index
    %c0_89 = arith.constant 0 : index
    %82 = vector.load %arg7[%c2_87, %c0_88, %c0_89] : memref<4x32x8xf32, #tpu.memory_space<vmem>>, vector<1x32x8xf32>
    %83 = vector.shape_cast %82 : vector<1x32x8xf32> to vector<32x8xf32>
    %cst_90 = arith.constant dense<0.000000e+00> : vector<8x8xf32>
    %84 = tpu.matmul %1, %83, %cst_90 {dimension_numbers = #tpu.dot_dimension_numbers<[1], [0], [0], [1], [0, 0, 1, 1], [], []>} : vector<8x32xf32>, vector<32x8xf32>, vector<8x8xf32> -> vector<8x8xf32>
    %c2_91 = arith.constant 2 : index
    %c0_92 = arith.constant 0 : index
    %c0_93 = arith.constant 0 : index
    %85 = vector.load %arg8[%c2_91, %c0_92, %c0_93] : memref<4x1x8xf32, #tpu.memory_space<vmem>>, vector<1x1x8xf32>
    %86 = vector.shape_cast %85 : vector<1x1x8xf32> to vector<1x8xf32>
    %87 = vector.broadcast %86 : vector<1x8xf32> to vector<8x8xf32>
    %88 = arith.addf %84, %87 : vector<8x8xf32>
    %c0_94 = arith.constant 0 : index
    %c2_95 = arith.constant 2 : index
    %c0_96 = arith.constant 0 : index
    %c0_97 = arith.constant 0 : index
    %89 = vector.load %arg11[%c0_94, %c2_95, %c0_96, %c0_97] : memref<1x4x8x8xf32, #tpu.memory_space<vmem>>, vector<1x1x8x8xf32>
    %90 = vector.shape_cast %89 : vector<1x1x8x8xf32> to vector<8x8xf32>
    %91 = vector.shape_cast %88 : vector<8x8xf32> to vector<1x1x8x8xf32>
    tpu.vector_store %arg11[%c0_94, %c2_95, %c0_96, %c0_97], %91 {strides = array<i32>} : memref<1x4x8x8xf32, #tpu.memory_space<vmem>>, vector<1x1x8x8xf32>,
    %c3 = arith.constant 3 : index
    %c0_98 = arith.constant 0 : index
    %c0_99 = arith.constant 0 : index
    %92 = vector.load %arg3[%c3, %c0_98, %c0_99] : memref<4x32x8xf32, #tpu.memory_space<vmem>>, vector<1x32x8xf32>
    %93 = vector.shape_cast %92 : vector<1x32x8xf32> to vector<32x8xf32>
    %cst_100 = arith.constant dense<0.000000e+00> : vector<8x8xf32>
    %94 = tpu.matmul %1, %93, %cst_100 {dimension_numbers = #tpu.dot_dimension_numbers<[1], [0], [0], [1], [0, 0, 1, 1], [], []>} : vector<8x32xf32>, vector<32x8xf32>, vector<8x8xf32> -> vector<8x8xf32>
    %c3_101 = arith.constant 3 : index
    %c0_102 = arith.constant 0 : index
    %c0_103 = arith.constant 0 : index
    %95 = vector.load %arg4[%c3_101, %c0_102, %c0_103] : memref<4x1x8xf32, #tpu.memory_space<vmem>>, vector<1x1x8xf32>
    %96 = vector.shape_cast %95 : vector<1x1x8xf32> to vector<1x8xf32>
    %97 = vector.broadcast %96 : vector<1x8xf32> to vector<8x8xf32>
    %98 = arith.addf %94, %97 : vector<8x8xf32>
    %c0_104 = arith.constant 0 : index
    %c3_105 = arith.constant 3 : index
    %c0_106 = arith.constant 0 : index
    %c0_107 = arith.constant 0 : index
    %99 = vector.load %arg9[%c0_104, %c3_105, %c0_106, %c0_107] : memref<1x4x8x8xf32, #tpu.memory_space<vmem>>, vector<1x1x8x8xf32>
    %100 = vector.shape_cast %99 : vector<1x1x8x8xf32> to vector<8x8xf32>
    %101 = vector.shape_cast %98 : vector<8x8xf32> to vector<1x1x8x8xf32>
    tpu.vector_store %arg9[%c0_104, %c3_105, %c0_106, %c0_107], %101 {strides = array<i32>} : memref<1x4x8x8xf32, #tpu.memory_space<vmem>>, vector<1x1x8x8xf32>,
    %c3_108 = arith.constant 3 : index
    %c0_109 = arith.constant 0 : index
    %c0_110 = arith.constant 0 : index
    %102 = vector.load %arg5[%c3_108, %c0_109, %c0_110] : memref<4x32x8xf32, #tpu.memory_space<vmem>>, vector<1x32x8xf32>
    %103 = vector.shape_cast %102 : vector<1x32x8xf32> to vector<32x8xf32>
    %cst_111 = arith.constant dense<0.000000e+00> : vector<8x8xf32>
    %104 = tpu.matmul %1, %103, %cst_111 {dimension_numbers = #tpu.dot_dimension_numbers<[1], [0], [0], [1], [0, 0, 1, 1], [], []>} : vector<8x32xf32>, vector<32x8xf32>, vector<8x8xf32> -> vector<8x8xf32>
    %c3_112 = arith.constant 3 : index
    %c0_113 = arith.constant 0 : index
    %c0_114 = arith.constant 0 : index
    %105 = vector.load %arg6[%c3_112, %c0_113, %c0_114] : memref<4x1x8xf32, #tpu.memory_space<vmem>>, vector<1x1x8xf32>
    %106 = vector.shape_cast %105 : vector<1x1x8xf32> to vector<1x8xf32>
    %107 = vector.broadcast %106 : vector<1x8xf32> to vector<8x8xf32>
    %108 = arith.addf %104, %107 : vector<8x8xf32>
    %c0_115 = arith.constant 0 : index
    %c3_116 = arith.constant 3 : index
    %c0_117 = arith.constant 0 : index
    %c0_118 = arith.constant 0 : index
    %109 = vector.load %arg10[%c0_115, %c3_116, %c0_117, %c0_118] : memref<1x4x8x8xf32, #tpu.memory_space<vmem>>, vector<1x1x8x8xf32>
    %110 = vector.shape_cast %109 : vector<1x1x8x8xf32> to vector<8x8xf32>
    %111 = vector.shape_cast %108 : vector<8x8xf32> to vector<1x1x8x8xf32>
    tpu.vector_store %arg10[%c0_115, %c3_116, %c0_117, %c0_118], %111 {strides = array<i32>} : memref<1x4x8x8xf32, #tpu.memory_space<vmem>>, vector<1x1x8x8xf32>,
    %c3_119 = arith.constant 3 : index
    %c0_120 = arith.constant 0 : index
    %c0_121 = arith.constant 0 : index
    %112 = vector.load %arg7[%c3_119, %c0_120, %c0_121] : memref<4x32x8xf32, #tpu.memory_space<vmem>>, vector<1x32x8xf32>
    %113 = vector.shape_cast %112 : vector<1x32x8xf32> to vector<32x8xf32>
    %cst_122 = arith.constant dense<0.000000e+00> : vector<8x8xf32>
    %114 = tpu.matmul %1, %113, %cst_122 {dimension_numbers = #tpu.dot_dimension_numbers<[1], [0], [0], [1], [0, 0, 1, 1], [], []>} : vector<8x32xf32>, vector<32x8xf32>, vector<8x8xf32> -> vector<8x8xf32>
    %c3_123 = arith.constant 3 : index
    %c0_124 = arith.constant 0 : index
    %c0_125 = arith.constant 0 : index
    %115 = vector.load %arg8[%c3_123, %c0_124, %c0_125] : memref<4x1x8xf32, #tpu.memory_space<vmem>>, vector<1x1x8xf32>
    %116 = vector.shape_cast %115 : vector<1x1x8xf32> to vector<1x8xf32>
    %117 = vector.broadcast %116 : vector<1x8xf32> to vector<8x8xf32>
    %118 = arith.addf %114, %117 : vector<8x8xf32>
    %c0_126 = arith.constant 0 : index
    %c3_127 = arith.constant 3 : index
    %c0_128 = arith.constant 0 : index
    %c0_129 = arith.constant 0 : index
    %119 = vector.load %arg11[%c0_126, %c3_127, %c0_128, %c0_129] : memref<1x4x8x8xf32, #tpu.memory_space<vmem>>, vector<1x1x8x8xf32>
    %120 = vector.shape_cast %119 : vector<1x1x8x8xf32> to vector<8x8xf32>
    %121 = vector.shape_cast %118 : vector<8x8xf32> to vector<1x1x8x8xf32>
    tpu.vector_store %arg11[%c0_126, %c3_127, %c0_128, %c0_129], %121 {strides = array<i32>} : memref<1x4x8x8xf32, #tpu.memory_space<vmem>>, vector<1x1x8x8xf32>,
    return
  }
  func.func @transform_0(%arg0: i32, %arg1: i32) -> (i32, i32, i32) {
    %c0_i32 = arith.constant 0 : i32
    %c0_i32_0 = arith.constant 0 : i32
    return %arg0, %arg1, %c0_i32 : i32, i32, i32
  }
  func.func @transform_1(%arg0: i32, %arg1: i32) -> (i32, i32, i32) {
    %c0_i32 = arith.constant 0 : i32
    %c0_i32_0 = arith.constant 0 : i32
    %c0_i32_1 = arith.constant 0 : i32
    %c0_i32_2 = arith.constant 0 : i32
    return %c0_i32, %c0_i32_0, %c0_i32_1 : i32, i32, i32
  }
  func.func @transform_2(%arg0: i32, %arg1: i32) -> (i32, i32, i32) {
    %c0_i32 = arith.constant 0 : i32
    %c0_i32_0 = arith.constant 0 : i32
    %c0_i32_1 = arith.constant 0 : i32
    %c0_i32_2 = arith.constant 0 : i32
    return %c0_i32, %c0_i32_0, %c0_i32_1 : i32, i32, i32
  }
  func.func @transform_3(%arg0: i32, %arg1: i32) -> (i32, i32, i32) {
    %c0_i32 = arith.constant 0 : i32
    %c0_i32_0 = arith.constant 0 : i32
    %c0_i32_1 = arith.constant 0 : i32
    %c0_i32_2 = arith.constant 0 : i32
    return %c0_i32, %c0_i32_0, %c0_i32_1 : i32, i32, i32
  }
  func.func @transform_4(%arg0: i32, %arg1: i32) -> (i32, i32, i32) {
    %c0_i32 = arith.constant 0 : i32
    %c0_i32_0 = arith.constant 0 : i32
    %c0_i32_1 = arith.constant 0 : i32
    %c0_i32_2 = arith.constant 0 : i32
    return %c0_i32, %c0_i32_0, %c0_i32_1 : i32, i32, i32
  }
  func.func @transform_5(%arg0: i32, %arg1: i32) -> (i32, i32, i32) {
    %c0_i32 = arith.constant 0 : i32
    %c0_i32_0 = arith.constant 0 : i32
    %c0_i32_1 = arith.constant 0 : i32
    %c0_i32_2 = arith.constant 0 : i32
    return %c0_i32, %c0_i32_0, %c0_i32_1 : i32, i32, i32
  }
  func.func @transform_6(%arg0: i32, %arg1: i32) -> (i32, i32, i32) {
    %c0_i32 = arith.constant 0 : i32
    %c0_i32_0 = arith.constant 0 : i32
    %c0_i32_1 = arith.constant 0 : i32
    %c0_i32_2 = arith.constant 0 : i32
    return %c0_i32, %c0_i32_0, %c0_i32_1 : i32, i32, i32
  }
  func.func @transform_7(%arg0: i32, %arg1: i32) -> (i32, i32, i32, i32) {
    %c0_i32 = arith.constant 0 : i32
    %c0_i32_0 = arith.constant 0 : i32
    %c0_i32_1 = arith.constant 0 : i32
    return %arg0, %c0_i32, %arg1, %c0_i32_0 : i32, i32, i32, i32
  }
  func.func @transform_8(%arg0: i32, %arg1: i32) -> (i32, i32, i32, i32) {
    %c0_i32 = arith.constant 0 : i32
    %c0_i32_0 = arith.constant 0 : i32
    %c0_i32_1 = arith.constant 0 : i32
    return %arg0, %c0_i32, %arg1, %c0_i32_0 : i32, i32, i32, i32
  }
  func.func @transform_9(%arg0: i32, %arg1: i32) -> (i32, i32, i32, i32) {
    %c0_i32 = arith.constant 0 : i32
    %c0_i32_0 = arith.constant 0 : i32
    %c0_i32_1 = arith.constant 0 : i32
    return %arg0, %c0_i32, %arg1, %c0_i32_0 : i32, i32, i32, i32
  }
}

</mosaic_0001>

<bundles_post_ra>
// kernel: tpu_custom_call.1
= control target key start
LH: loop header
LB: loop body
LE: loop exit
PB: predicated region body
PF: predicated region fallthrough
CT: control target
= control target key end

     0   :  { %s2656_s0 = inlined_call_operand.vmem [shape: f32[2,8,32], index: 0, kind: input, shape index: {}]   ;;  %s2657_s1 = inlined_call_operand.vmem [shape: f32[4,32,8], index: 1, kind: input, shape index: {}]   ;;  %s2658_s2 = inlined_call_operand.vmem [shape: f32[4,1,8], index: 2, kind: input, shape index: {}]   ;;  %s2659_s3 = inlined_call_operand.vmem [shape: f32[4,32,8], index: 3, kind: input, shape index: {}]   ;;  %s2660_s4 = inlined_call_operand.vmem [shape: f32[4,1,8], index: 4, kind: input, shape index: {}]   ;;  %s2661_s5 = inlined_call_operand.vmem [shape: f32[4,32,8], index: 5, kind: input, shape index: {}]   ;;  %s2662_s6 = inlined_call_operand.vmem [shape: f32[4,1,8], index: 6, kind: input, shape index: {}]   ;;  %s2663_s7 = inlined_call_operand.hbm [shape: f32[2,4,8,8], index: 7, kind: output, shape index: {0}]   ;;  %s2664_s8 = inlined_call_operand.hbm [shape: f32[2,4,8,8], index: 8, kind: output, shape index: {1}]   ;;  %s2665_s9 = inlined_call_operand.hbm [shape: f32[2,4,8,8], index: 9, kind: output, shape index: {2}]  }
   0x1   :  { %2670 = sst [smem:[#allocation9_spill]] %s2656_s0 }
   0x2   :  { %2671 = sst [smem:[#allocation10_spill]] %s2657_s1 }
   0x3   :  { %2672 = sst [smem:[#allocation11_spill]] %s2658_s2 }
   0x4   :  { %2673 = sst [smem:[#allocation12_spill]] %s2659_s3 }
   0x5   :  { %15 = vsyncpa [#allocation3], 0 }
   0x6   :  { %17 = vsyncpa [#allocation3 + $0x1], 0 }
   0x7   :  { %18 = vsyncpa [#allocation5], 0 }
   0x8   :  { %20 = vsyncpa [#allocation5 + $0x1], 0  ;;  %s2144_s30 = smov 0   ;;  %s2146_s10 = smov 0  }
   0x9   :  { %s2148_s11 = smov 0   ;;  %s2150_s12 = smov 0  }
   0xa   :  { %s2152_s13 = smov 0   ;;  %s2154_s14 = smov 0  }
   0xb LB: > { %s2667_s15 = sadd.s32 4294967295, %s2085_s14   ;;  %s2666_s16 = sadd.s32 4294967294, %s2085_s14   ;;  %s2085_s14 = sphi %s2154_s14, %s26_s14   ;;  %s2081_s13 = sphi %s2152_s13, %s2687_s13   ;;  %s2077_s12 = sphi %s2150_s12, %s2686_s12   ;;  %s2073_s11 = sphi %s2148_s11, %s2685_s11   ;;  %s2069_s10 = sphi %s2146_s10, %s2684_s10   ;;  %s2065_s30 = sphi %s2144_s30, %s2683_s30  }
   0xc   : > { %s38_s17 = sadd.s32 1, %s2081_s13  ;;  %s201_s18 = sadd.s32 1, %s2073_s11 }
   0xd   : > { %p40_p0 = scmp.ge.s32.totalorder %s38_s17, 2  ;;  %p211_p1 = scmp.ne.s32.totalorder %s2073_s11, %s2069_s10 }
   0xe   : > { %p212_p2 = scmp.eq.s32.totalorder %s2667_s15, 1  ;;  %p217_p3 = scmp.ne.s32.totalorder %s2069_s10, %s2065_s30 }
   0xf   : > { %s2689_s17 = smov (%p40_p0, %s38_s17), 0  ;;  %p218_p5 = scmp.eq.s32.totalorder %s2666_s16, 1 }
  0x10   : > { %p2186_p4 = por %p212_p2, %p211_p1  ;;  %s196_s20 = ssub.s32 %s2081_s13, %s2689_s17 }
  0x11   : > { %p1595_p6 = scmp.ge.s32.totalorder %s2085_s14, 1  ;;  %p199_p7 = scmp.eq.s32.totalorder %s196_s20, 0 }
  0x12   : > { %p2195_p8 = por %p218_p5, %p217_p3  ;;  %p320_p9 = scmp.lt.s32.totalorder %s2085_s14, 3 }
  0x13   : > { %s2201_s22 = scalar_select %p199_p7, %s2073_s11, %s201_s18  }
  0x14   : > { %p321_p10 = pnand %p1595_p6, %p320_p9 }
  0x15   : > { %s2676_s1 = sld [smem:[#allocation10_spill]] (!%p321_p10)  ;;  %p368_p11 = scmp.lt.s32.totalorder (!%p321_p10), %s2077_s12, 1 }
  0x16   : > { %324 = sbr.rel (%p321_p10) target bundleno = 333 (0x14d), region = 48  ;;  %s2677_s3 = sld [smem:[#allocation12_spill]] (!%p321_p10) }
  0x17   : > { %s2678_s0 = sld [smem:[#allocation9_spill]] (!%p321_p10)  ;;  %s351_s16 = sand.u32 (!%p321_p10), 1, %s2069_s10  }
  0x18   : > { %s2679_s2 = sld [smem:[#allocation11_spill]] (!%p321_p10)  ;;  %s2507_s24 = sshll.u32 (!%p321_p10), %s2077_s12, 9 }
  0x19   : > { %s2089_s29 = smov (!%p321_p10), [#allocation2]  }
  0x1b   : > { %v379_v0 = vld [vmem:[%s2676_s1 + $0x18] sm:$0xff]  ;;  %v2087_v2 = vmov 0.0   ;;  %v378_v3 = vld [vmem:[%s2676_s1 + $0x10] sm:$0xff]  ;;  %s369_s20 = scalar_select %p368_p11, %s2077_s12, 1  ;;  %v377_v5 = vld [vmem:[%s2676_s1 + $0x8] sm:$0xff]  ;;  %vm387_vm0 = vcmask 261120  }
  0x1c   : > { %v466_v1 = vld [vmem:[%s2677_s3 + $0x18] sm:$0xff]  ;;  %1752 = vmatprep.subr.mxu0 %v2087_v2  ;;  %1763 = vmatprep.subr.mxu1 %v2087_v2  ;;  %v465_v4 = vld [vmem:[%s2677_s3 + $0x10] sm:$0xff]  ;;  %v464_v6 = vld [vmem:[%s2677_s3 + $0x8] sm:$0xff]  ;;  %vm2088_vm1 = vmmov 0   ;;  %vm461_vm2 = vcmask 64512   ;;  %s2523_s12 = scalar_lea.sflag [#allocation3], %s351_s16 }
  0x1d   : > { %1753 = vmatpush3.msra.mxu0 %v379_v0  ;;  %1764 = vmatpush3.msra.mxu1 %v466_v1  ;;  %s1599_s27 = sshll.u32 %s369_s20, 3  ;;  %v376_v7 = vld [vmem:[%s2676_s1] sm:$0xff]  ;;  %v548_v10 = vld [vmem:[%s2661_s5 + $0x18] sm:$0xff]  ;;  %v547_v12 = vld [vmem:[%s2661_s5 + $0x10] sm:$0xff]  ;;  %s1596_s20 = sshll.u32 %s351_s16, 5 }
  0x1e   : > { %1754 = vmatprep.subr.mxu0 %v2087_v2  ;;  %1765 = vmatprep.subr.mxu1 %v2087_v2  ;;  %s374_s23 = scalar_lea.vmem %s2678_s0, %s1599_s27  ;;  %v463_v8 = vld [vmem:[%s2677_s3] sm:$0xff]  ;;  %v1609_v11 = vld [vmem:[%s2676_s1 + $0x38] sm:$0xff]  ;;  %v1608_v13 = vld [vmem:[%s2676_s1 + $0x30] sm:$0xff]  ;;  %s2459_s18 = scalar_lea.vmem [#allocation2], %s1596_s20 }
  0x1f   : > { %1755 = vmatpush3.msra.mxu0 %v378_v3  ;;  %1766 = vmatpush3.msra.mxu1 %v465_v4  ;;  %v2240_v9 = vld [vmem:[%s374_s23] sm:$0xff]  ;;  %v546_v14 = vld [vmem:[%s2661_s5 + $0x8] sm:$0xff]  ;;  %v1617_v18 = vld [vmem:[%s2677_s3 + $0x38] sm:$0xff]  ;;  %s2463_s23 = scalar_lea.vmem [#allocation4], %s1596_s20  ;;  %s2473_s28 = scalar_lea.vmem [#allocation6], %s1596_s20 }
  0x20   : > { %1756 = vmatprep.subr.mxu0 %v2087_v2  ;;  %1767 = vmatprep.subr.mxu1 %v2087_v2  ;;  %v1607_v15 = vld [vmem:[%s2676_s1 + $0x28] sm:$0xff]  ;;  %v545_v16 = vld [vmem:[%s2661_s5] sm:$0xff]  ;;  %v1625_v19 = vld [vmem:[%s2661_s5 + $0x38] sm:$0xff]  ;;  %s1417_s25 = sshll.u32 %s2459_s18, 4  ;;  %s2515_s20 = scalar_lea.hbm %s2663_s7, %s2507_s24  ;;  %s2509_s25 = int_to_ptr.vmem [resolvable:$true] %s1417_s25 }
  0x21   : > { %1757 = vmatpush3.msra.mxu0 %v377_v5  ;;  %1768 = vmatpush3.msra.mxu1 %v464_v6  ;;  %v1606_v17 = vld [vmem:[%s2676_s1 + $0x20] sm:$0xff]  ;;  %v1616_v20 = vld [vmem:[%s2677_s3 + $0x30] sm:$0xff]  ;;  %v1615_v22 = vld [vmem:[%s2677_s3 + $0x28] sm:$0xff]  ;;  %s1953_s27 = scalar_lea.vmem %s2509_s25, 512  ;;  %s1957_s0 = sshll.u32 %s2089_s29, 4  ;;  %s1958_s0 = int_to_ptr.vmem [resolvable:$false] %s1957_s0 }
  0x22   : > { %1758 = vmatprep.subr.mxu0 %v2087_v2  ;;  %1769 = vmatprep.subr.mxu1 %v2087_v2  ;;  %v1624_v21 = vld [vmem:[%s2661_s5 + $0x30] sm:$0xff]  ;;  %v1623_v23 = vld [vmem:[%s2661_s5 + $0x28] sm:$0xff]  ;;  %v1614_v24 = vld [vmem:[%s2677_s3 + $0x20] sm:$0xff]  ;;  %p1954_p12 = scmp.ne.s32.totalorder %s2509_s25, %s1953_s27  ;;  %s1959_s15 = scalar_lea.vmem %s1958_s0, 1024 }
  0x23   : > { %1759 = vmatpush3.msra.mxu0 %v376_v7  ;;  %1760 = vmatprep.mubr.msk.f32.mxu0 %vm2088_vm1, %v2087_v2  ;;  %v1622_v25 = vld [vmem:[%s2661_s5 + $0x20] sm:$0xff]  ;;  %v1633_v26 = vld [vmem:[%s2676_s1 + $0x58] sm:$0xff]  ;;  %v1632_v28 = vld [vmem:[%s2676_s1 + $0x50] sm:$0xff]  ;;  %p1960_p1 = scmp.lt.s32.totalorder %s2509_s25, %s1958_s0  ;;  %p1961_p2 = scmp.lt.s32.totalorder %s1959_s15, %s1953_s27 }
  0x24   : > { %1770 = vmatpush3.msra.mxu1 %v463_v8  ;;  %1771 = vmatprep.mubr.msk.f32.mxu1 %vm2088_vm1, %v2087_v2  ;;  %v1641_v27 = vld [vmem:[%s2677_s3 + $0x58] sm:$0xff]  ;;  %v1640_v29 = vld [vmem:[%s2677_s3 + $0x50] sm:$0xff]  ;;  %v1631_v30 = vld [vmem:[%s2676_s1 + $0x48] sm:$0xff]  ;;  %p1955_p13 = pnand %p1954_p12, %p2186_p4 }
  0x25   : > { %1761 = vmatmul.mubr.msk.f32.vlgmr.msra.gmra.mxu0 %vm387_vm0, %v2240_v9  ;;  %1772 = vmatmul.mubr.msk.f32.vlgmr.msra.gmra.mxu1 %vm387_vm0, %v2240_v9  ;;  %v1639_v31 = vld [vmem:[%s2677_s3 + $0x48] sm:$0xff]  ;;  %v1630_v32 = vld [vmem:[%s2676_s1 + $0x40] sm:$0xff]  ;;  %v1649_v34 = vld [vmem:[%s2661_s5 + $0x58] sm:$0xff]  ;;  %p1962_p3 = por %p1961_p2, %p1960_p1 }
  0x26   : > { %1774 = vmatprep.subr.mxu0 %v2087_v2  ;;  %1785 = vmatprep.subr.mxu1 %v2087_v2  ;;  %v1638_v33 = vld [vmem:[%s2677_s3 + $0x40] sm:$0xff]  ;;  %v1657_v35 = vld [vmem:[%s2676_s1 + $0x78] sm:$0xff]  ;;  %v1648_v36 = vld [vmem:[%s2661_s5 + $0x50] sm:$0xff]  ;;  %p1956_p0 = pneg %p1955_p13 }
  0x27   : > { %1775 = vmatpush3.msra.mxu0 %v548_v10  ;;  %1786 = vmatpush3.msra.mxu1 %v1609_v11  ;;  %v1656_v37 = vld [vmem:[%s2676_s1 + $0x70] sm:$0xff]  ;;  %v1647_v38 = vld [vmem:[%s2661_s5 + $0x48] sm:$0xff]  ;;  %v1646_v40 = vld [vmem:[%s2661_s5 + $0x40] sm:$0xff] }
  0x28   : > { %1776 = vmatprep.subr.mxu0 %v2087_v2  ;;  %1787 = vmatprep.subr.mxu1 %v2087_v2  ;;  %v1655_v39 = vld [vmem:[%s2676_s1 + $0x68] sm:$0xff]  ;;  %v1654_v41 = vld [vmem:[%s2676_s1 + $0x60] sm:$0xff]  ;;  %v1665_v42 = vld [vmem:[%s2677_s3 + $0x78] sm:$0xff]  ;;  %p1963_p5 = pnand %p1962_p3, %p1956_p0 }
  0x29   : > { %1777 = vmatpush3.msra.mxu0 %v547_v12  ;;  %1788 = vmatpush3.msra.mxu1 %v1608_v13  ;;  %v1673_v43 = vld [vmem:[%s2661_s5 + $0x78] sm:$0xff]  ;;  %v1664_v44 = vld [vmem:[%s2677_s3 + $0x70] sm:$0xff]  ;;  %v1663_v46 = vld [vmem:[%s2677_s3 + $0x68] sm:$0xff] }
  0x2a   : > { %1778 = vmatprep.subr.mxu0 %v2087_v2  ;;  %1789 = vmatprep.subr.mxu1 %v2087_v2  ;;  %v1672_v45 = vld [vmem:[%s2661_s5 + $0x70] sm:$0xff]  ;;  %v1671_v47 = vld [vmem:[%s2661_s5 + $0x68] sm:$0xff]  ;;  %v1662_v48 = vld [vmem:[%s2677_s3 + $0x60] sm:$0xff] }
  0x2b   : > { %1779 = vmatpush3.msra.mxu0 %v546_v14  ;;  %1790 = vmatpush3.msra.mxu1 %v1607_v15  ;;  %v1670_v49 = vld [vmem:[%s2661_s5 + $0x60] sm:$0xff] }
  0x2c   : > { %1780 = vmatprep.subr.mxu0 %v2087_v2  ;;  %1791 = vmatprep.subr.mxu1 %v2087_v2  ;;  %v1600_v50 = vld [vmem:[%s2679_s2] ss:$0 sm:$0xff]  ;;  %v1611_v59 = vld [vmem:[%s2679_s2 + $0x1] ss:$0 sm:$0xff]  ;;  %v1635_v10 = vld [vmem:[%s2679_s2 + $0x2] ss:$0 sm:$0xff] }
  0x2d   : > { %1781 = vmatpush3.msra.mxu0 %v545_v16  ;;  %1782 = vmatprep.mubr.msk.f32.mxu0 %vm2088_vm1, %v2087_v2  ;;  %v1602_v51 = vld [vmem:[%s2660_s4] ss:$0 sm:$0xff]  ;;  %v1627_v3 = vld [vmem:[%s2662_s6 + $0x1] ss:$0 sm:$0xff]  ;;  %v1643_v11 = vld [vmem:[%s2660_s4 + $0x2] ss:$0 sm:$0xff] }
  0x2e   : > { %1792 = vmatpush3.msra.mxu1 %v1606_v17  ;;  %1793 = vmatprep.mubr.msk.f32.mxu1 %vm2088_vm1, %v2087_v2  ;;  %v1604_v58 = vld [vmem:[%s2662_s6] ss:$0 sm:$0xff] }
  0x2f   : > { %1783 = vmatmul.mubr.msk.f32.vlgmr.msra.gmra.mxu0 %vm387_vm0, %v2240_v9  ;;  %1794 = vmatmul.mubr.msk.f32.vlgmr.msra.gmra.mxu1 %vm387_vm0, %v2240_v9 }
  0x30   : > { %1796 = vmatprep.subr.mxu0 %v2087_v2  ;;  %1807 = vmatprep.subr.mxu1 %v2087_v2 }
  0x31   : > { %1797 = vmatpush3.msra.mxu0 %v1617_v18  ;;  %1808 = vmatpush3.msra.mxu1 %v1625_v19  ;;  %v1651_v18 = vld [vmem:[%s2662_s6 + $0x2] ss:$0 sm:$0xff]  ;;  %v1659_v19 = vld [vmem:[%s2679_s2 + $0x3] ss:$0 sm:$0xff] }
  0x32   : > { %1798 = vmatprep.subr.mxu0 %v2087_v2  ;;  %1809 = vmatprep.subr.mxu1 %v2087_v2 }
  0x33   : > { %1799 = vmatpush3.msra.mxu0 %v1616_v20  ;;  %1810 = vmatpush3.msra.mxu1 %v1624_v21 }
  0x34   : > { %1800 = vmatprep.subr.mxu0 %v2087_v2  ;;  %1811 = vmatprep.subr.mxu1 %v2087_v2 }
  0x35   : > { %1801 = vmatpush3.msra.mxu0 %v1615_v22  ;;  %1812 = vmatpush3.msra.mxu1 %v1623_v23 }
  0x36   : > { %1802 = vmatprep.subr.mxu0 %v2087_v2  ;;  %1813 = vmatprep.subr.mxu1 %v2087_v2 }
  0x37   : > { %1803 = vmatpush3.msra.mxu0 %v1614_v24  ;;  %1804 = vmatprep.mubr.msk.f32.mxu0 %vm2088_vm1, %v2087_v2 }
  0x38   : > { %1814 = vmatpush3.msra.mxu1 %v1622_v25  ;;  %1815 = vmatprep.mubr.msk.f32.mxu1 %vm2088_vm1, %v2087_v2 }
  0x39   : > { %1805 = vmatmul.mubr.msk.f32.vlgmr.msra.gmra.mxu0 %vm387_vm0, %v2240_v9  ;;  %1816 = vmatmul.mubr.msk.f32.vlgmr.msra.gmra.mxu1 %vm387_vm0, %v2240_v9 }
  0x3a   : > { %1818 = vmatprep.subr.mxu0 %v2087_v2  ;;  %1829 = vmatprep.subr.mxu1 %v2087_v2 }
  0x3b   : > { %1819 = vmatpush3.msra.mxu0 %v1633_v26  ;;  %1830 = vmatpush3.msra.mxu1 %v1641_v27 }
  0x3c   : > { %1820 = vmatprep.subr.mxu0 %v2087_v2  ;;  %1831 = vmatprep.subr.mxu1 %v2087_v2 }
  0x3d   : > { %1821 = vmatpush3.msra.mxu0 %v1632_v28  ;;  %1832 = vmatpush3.msra.mxu1 %v1640_v29 }
  0x3e   : > { %1822 = vmatprep.subr.mxu0 %v2087_v2  ;;  %1833 = vmatprep.subr.mxu1 %v2087_v2 }
  0x3f   : > { %1823 = vmatpush3.msra.mxu0 %v1631_v30  ;;  %1834 = vmatpush3.msra.mxu1 %v1639_v31 }
  0x40   : > { %1824 = vmatprep.subr.mxu0 %v2087_v2  ;;  %1835 = vmatprep.subr.mxu1 %v2087_v2 }
  0x41   : > { %1825 = vmatpush3.msra.mxu0 %v1630_v32  ;;  %1826 = vmatprep.mubr.msk.f32.mxu0 %vm2088_vm1, %v2087_v2 }
  0x42   : > { %1836 = vmatpush3.msra.mxu1 %v1638_v33  ;;  %1837 = vmatprep.mubr.msk.f32.mxu1 %vm2088_vm1, %v2087_v2 }
  0x43   : > { %1827 = vmatmul.mubr.msk.f32.vlgmr.msra.gmra.mxu0 %vm387_vm0, %v2240_v9  ;;  %1838 = vmatmul.mubr.msk.f32.vlgmr.msra.gmra.mxu1 %vm387_vm0, %v2240_v9 }
  0x44   : > { %1840 = vmatprep.subr.mxu0 %v2087_v2  ;;  %1851 = vmatprep.subr.mxu1 %v2087_v2 }
  0x45   : > { %1841 = vmatpush3.msra.mxu0 %v1649_v34  ;;  %1852 = vmatpush3.msra.mxu1 %v1657_v35 }
  0x46   : > { %1842 = vmatprep.subr.mxu0 %v2087_v2  ;;  %1853 = vmatprep.subr.mxu1 %v2087_v2 }
  0x47   : > { %1843 = vmatpush3.msra.mxu0 %v1648_v36  ;;  %1854 = vmatpush3.msra.mxu1 %v1656_v37 }
  0x48   : > { %1844 = vmatprep.subr.mxu0 %v2087_v2  ;;  %1855 = vmatprep.subr.mxu1 %v2087_v2 }
  0x49   : > { %1845 = vmatpush3.msra.mxu0 %v1647_v38  ;;  %1856 = vmatpush3.msra.mxu1 %v1655_v39 }
  0x4a   : > { %1846 = vmatprep.subr.mxu0 %v2087_v2  ;;  %1857 = vmatprep.subr.mxu1 %v2087_v2 }
  0x4b   : > { %1847 = vmatpush3.msra.mxu0 %v1646_v40  ;;  %1848 = vmatprep.mubr.msk.f32.mxu0 %vm2088_vm1, %v2087_v2 }
  0x4c   : > { %1858 = vmatpush3.msra.mxu1 %v1654_v41  ;;  %1859 = vmatprep.mubr.msk.f32.mxu1 %vm2088_vm1, %v2087_v2 }
  0x4d   : > { %1849 = vmatmul.mubr.msk.f32.vlgmr.msra.gmra.mxu0 %vm387_vm0, %v2240_v9  ;;  %1860 = vmatmul.mubr.msk.f32.vlgmr.msra.gmra.mxu1 %vm387_vm0, %v2240_v9 }
  0x4e   : > { %1862 = vmatprep.subr.mxu0 %v2087_v2  ;;  %1873 = vmatprep.subr.mxu1 %v2087_v2 }
  0x4f   : > { %1863 = vmatpush3.msra.mxu0 %v1665_v42  ;;  %1874 = vmatpush3.msra.mxu1 %v1673_v43 }
  0x50   : > { %1864 = vmatprep.subr.mxu0 %v2087_v2  ;;  %1875 = vmatprep.subr.mxu1 %v2087_v2 }
  0x51   : > { %1865 = vmatpush3.msra.mxu0 %v1664_v44  ;;  %1876 = vmatpush3.msra.mxu1 %v1672_v45 }
  0x52   : > { %1866 = vmatprep.subr.mxu0 %v2087_v2  ;;  %1877 = vmatprep.subr.mxu1 %v2087_v2 }
  0x53   : > { %1867 = vmatpush3.msra.mxu0 %v1663_v46  ;;  %1878 = vmatpush3.msra.mxu1 %v1671_v47 }
  0x54   : > { %1868 = vmatprep.subr.mxu0 %v2087_v2  ;;  %1879 = vmatprep.subr.mxu1 %v2087_v2 }
  0x55   : > { %1869 = vmatpush3.msra.mxu0 %v1662_v48  ;;  %1870 = vmatprep.mubr.msk.f32.mxu0 %vm2088_vm1, %v2087_v2 }
  0x56   : > { %1880 = vmatpush3.msra.mxu1 %v1670_v49  ;;  %1881 = vmatprep.mubr.msk.f32.mxu1 %vm2088_vm1, %v2087_v2  ;;  %v1619_v2 = vld [vmem:[%s2660_s4 + $0x1] ss:$0 sm:$0xff] }
  0x57   : > { %1871 = vmatmul.mubr.msk.f32.vlgmr.msra.gmra.mxu0 %vm387_vm0, %v2240_v9  ;;  %1882 = vmatmul.mubr.msk.f32.vlgmr.msra.gmra.mxu1 %vm387_vm0, %v2240_v9 }
  0xe5   : > { %v457_v52 = vpop.f32.mrf.mxu0  ;;  %v540_v53 = vpop.f32.mrf.mxu1 }
  0xe6   : > { %v458_v54 = vadd.f32 %v1600_v50, %v457_v52  ;;  %v541_v55 = vadd.f32 %v1602_v51, %v540_v53 }
  0xe7   : > { %v1762_v56 = vpop.f32.mrf.mxu0  ;;  %v1773_v57 = vpop.f32.mrf.mxu1 }
  0xe8   : > { %462 = vst.msk [vmem:[%s2459_s18] sm:$0xff] %vm461_vm2, %v458_v54  ;;  %544 = vst.msk [vmem:[%s2463_s23] sm:$0xff] %vm461_vm2, %v541_v55 }
  0xef   : > { %v622_v60 = vpop.f32.mrf.mxu0  ;;  %v706_v61 = vpop.f32.mrf.mxu1 }
  0xf0   : > { %v623_v62 = vadd.f32 %v1604_v58, %v622_v60  ;;  %v707_v63 = vadd.f32 %v1611_v59, %v706_v61 }
  0xf1   : > { %v1784_v0 = vpop.f32.mrf.mxu0  ;;  %v1795_v1 = vpop.f32.mrf.mxu1 }
  0xf2   : > { %626 = vst.msk [vmem:[%s2473_s28] sm:$0xff] %vm461_vm2, %v623_v62  ;;  %1613 = vst.msk [vmem:[%s2459_s18 + $0x8] sm:$0xff] %vm461_vm2, %v707_v63 }
  0xf9   : > { %v791_v4 = vpop.f32.mrf.mxu0  ;;  %v876_v5 = vpop.f32.mrf.mxu1 }
  0xfa   : > { %v792_v6 = vadd.f32 %v1619_v2, %v791_v4  ;;  %v877_v7 = vadd.f32 %v1627_v3, %v876_v5 }
  0xfb   : > { %v1806_v8 = vpop.f32.mrf.mxu0  ;;  %v1817_v9 = vpop.f32.mrf.mxu1 }
  0xfc   : > { %1621 = vst.msk [vmem:[%s2463_s23 + $0x8] sm:$0xff] %vm461_vm2, %v792_v6  ;;  %1629 = vst.msk [vmem:[%s2473_s28 + $0x8] sm:$0xff] %vm461_vm2, %v877_v7 }
 0x103   : > { %v961_v12 = vpop.f32.mrf.mxu0  ;;  %v1046_v13 = vpop.f32.mrf.mxu1 }
 0x104   : > { %v962_v14 = vadd.f32 %v1635_v10, %v961_v12  ;;  %v1047_v15 = vadd.f32 %v1643_v11, %v1046_v13 }
 0x105   : > { %v1828_v16 = vpop.f32.mrf.mxu0  ;;  %v1839_v17 = vpop.f32.mrf.mxu1 }
 0x106   : > { %1637 = vst.msk [vmem:[%s2459_s18 + $0x10] sm:$0xff] %vm461_vm2, %v962_v14  ;;  %1645 = vst.msk [vmem:[%s2463_s23 + $0x10] sm:$0xff] %vm461_vm2, %v1047_v15 }
 0x10d   : > { %v1131_v20 = vpop.f32.mrf.mxu0  ;;  %v1216_v21 = vpop.f32.mrf.mxu1 }
 0x10e   : > { %v1132_v22 = vadd.f32 %v1651_v18, %v1131_v20  ;;  %v1217_v23 = vadd.f32 %v1659_v19, %v1216_v21 }
 0x10f   : > { %v1850_v24 = vpop.f32.mrf.mxu0  ;;  %v1861_v25 = vpop.f32.mrf.mxu1 }
 0x110   : > { %1653 = vst.msk [vmem:[%s2473_s28 + $0x10] sm:$0xff] %vm461_vm2, %v1132_v22  ;;  %1661 = vst.msk [vmem:[%s2459_s18 + $0x18] sm:$0xff] %vm461_vm2, %v1217_v23 }
 0x111   : > { %1966 = shalt.err (!%p1963_p5)
}
 0x112   : > { %s1967_s16 = scalar_lea.hbm %s2515_s20, 512  ;;  %s1971_s29 = scalar_lea.hbm %s2663_s7, 1024 }
 0x113   : > { %p1968_p6 = scmp.ne.s32.totalorder %s2515_s20, %s1967_s16  ;;  %p1972_p10 = scmp.lt.s32.totalorder %s2515_s20, %s2663_s7 }
 0x114   : > { %p1973_p11 = scmp.lt.s32.totalorder %s1971_s29, %s1967_s16 }
 0x115   : > { %p1969_p7 = pnand %p1968_p6, %p2186_p4 }
 0x116   : > { %p1974_p12 = por %p1973_p11, %p1972_p10 }
 0x117   : > { %p1970_p9 = pneg %p1969_p7 }
 0x119   : > { %p1975_p13 = pnand %p1974_p12, %p1970_p9 }
 0x11b   : > { %1978 = shalt.err (!%p1975_p13)
}
 0x11c   : > { %s2668_s0 = smov 128   ;;  %s2091_s27 = smov 8   ;;  %v1667_v26 = vld [vmem:[%s2660_s4 + $0x3] ss:$0 sm:$0xff]  ;;  %v1301_v28 = vpop.f32.mrf.mxu0  ;;  %v1386_v29 = vpop.f32.mrf.mxu1 }
 0x11d   : > { %1884 = dma.vmem_to_hbm [thread:$0]  (%p2186_p4), %s2509_s25, 512, %s2515_s20, %s2523_s12, %s2668_s0, %s2668_s0, %s2091_s27   ;;  %v1302_v30 = vadd.f32 %v1667_v26, %v1301_v28 }
 0x11e   : > { %s1434_s1 = sshll.u32 %s2463_s23, 4  ;;  %v1675_v27 = vld [vmem:[%s2662_s6 + $0x3] ss:$0 sm:$0xff]  ;;  %s2680_s26 = sadd.s32 4294967295, %s2085_s14   ;;  %v1872_v32 = vpop.f32.mrf.mxu0  ;;  %v1883_v33 = vpop.f32.mrf.mxu1  ;;  %s2561_s1 = int_to_ptr.vmem [resolvable:$true] %s1434_s1 }
 0x11f   : > { %s2558_s29 = sand.u32 1, %s2680_s26   ;;  %s1451_s3 = sshll.u32 %s2473_s28, 4  ;;  %v1387_v31 = vadd.f32 %v1675_v27, %v1386_v29  ;;  %1669 = vst.msk [vmem:[%s2463_s23 + $0x18] sm:$0xff] %vm461_vm2, %v1302_v30  ;;  %s2569_s3 = int_to_ptr.vmem [resolvable:$true] %s1451_s3 }
 0x120   : > { %s2567_s12 = scalar_lea.hbm %s2664_s8, %s2507_s24  ;;  %s2575_s16 = scalar_lea.hbm %s2665_s9, %s2507_s24 }
 0x121   : > { %1677 = vst.msk [vmem:[%s2473_s28 + $0x18] sm:$0xff] %vm461_vm2, %v1387_v31  ;;  %s1398_s18 = scalar_lea.sflag [#allocation5], %s2558_s29  ;;  %s1979_s26 = scalar_lea.vmem %s2561_s1, 512 }
 0x122   : > { %p1980_p0 = scmp.ne.s32.totalorder %s2561_s1, %s1979_s26  ;;  %s2092_s25 = smov [#allocation4]  }
 0x123   : > { %s1983_s20 = sshll.u32 %s2092_s25, 4  ;;  %s1984_s20 = int_to_ptr.vmem [resolvable:$false] %s1983_s20 }
 0x124   : > { %p1981_p1 = pnand %p1980_p0, %p2186_p4  ;;  %s1985_s0 = scalar_lea.vmem %s1984_s20, 1024 }
 0x125   : > { %p1986_p3 = scmp.lt.s32.totalorder %s2561_s1, %s1984_s20  ;;  %p1987_p5 = scmp.lt.s32.totalorder %s1985_s0, %s1979_s26 }
 0x126   : > { %p1982_p2 = pneg %p1981_p1 }
 0x127   : > { %p1988_p6 = por %p1987_p5, %p1986_p3 }
 0x129   : > { %p1989_p7 = pnand %p1988_p6, %p1982_p2 }
 0x12b   : > { %1992 = shalt.err (!%p1989_p7)
}
 0x12c   : > { %s1993_s23 = scalar_lea.hbm %s2567_s12, 512  ;;  %s1997_s2 = scalar_lea.hbm %s2664_s8, 1024 }
 0x12d   : > { %p1994_p9 = scmp.ne.s32.totalorder %s2567_s12, %s1993_s23  ;;  %p1998_p12 = scmp.lt.s32.totalorder %s2567_s12, %s2664_s8 }
 0x12e   : > { %p1999_p13 = scmp.lt.s32.totalorder %s1997_s2, %s1993_s23 }
 0x12f   : > { %p1995_p10 = pnand %p1994_p9, %p2186_p4 }
 0x130   : > { %p2000_p0 = por %p1999_p13, %p1998_p12 }
 0x131   : > { %p1996_p11 = pneg %p1995_p10 }
 0x133   : > { %p2001_p1 = pnand %p2000_p0, %p1996_p11 }
 0x135   : > { %2004 = shalt.err (!%p2001_p1)
}
 0x136   : > { %s2681_s0 = smov 128   ;;  %s2005_s26 = scalar_lea.vmem %s2569_s3, 512 }
 0x137   : > { %1885 = dma.vmem_to_hbm [thread:$0]  (%p2186_p4), %s2561_s1, 512, %s2567_s12, %s1398_s18, %s2681_s0, %s2681_s0, %s2091_s27  }
 0x138   : > { %p2006_p2 = scmp.ne.s32.totalorder %s2569_s3, %s2005_s26  ;;  %s2093_s20 = smov [#allocation6]  }
 0x139   : > { %s2009_s23 = sshll.u32 %s2093_s20, 4  ;;  %s2010_s23 = int_to_ptr.vmem [resolvable:$false] %s2009_s23 }
 0x13a   : > { %p2007_p3 = pnand %p2006_p2, %p2186_p4  ;;  %s2011_s28 = scalar_lea.vmem %s2010_s23, 1024 }
 0x13b   : > { %p2012_p6 = scmp.lt.s32.totalorder %s2569_s3, %s2010_s23  ;;  %p2013_p7 = scmp.lt.s32.totalorder %s2011_s28, %s2005_s26 }
 0x13c   : > { %p2008_p5 = pneg %p2007_p3 }
 0x13d   : > { %p2014_p9 = por %p2013_p7, %p2012_p6 }
 0x13f   : > { %p2015_p10 = pnand %p2014_p9, %p2008_p5 }
 0x141   : > { %2018 = shalt.err (!%p2015_p10)
}
 0x142   : > { %s2019_s24 = scalar_lea.hbm %s2575_s16, 512  ;;  %s2023_s2 = scalar_lea.hbm %s2665_s9, 1024 }
 0x143   : > { %p2020_p11 = scmp.ne.s32.totalorder %s2575_s16, %s2019_s24  ;;  %p2024_p0 = scmp.lt.s32.totalorder %s2575_s16, %s2665_s9 }
 0x144   : > { %p2025_p1 = scmp.lt.s32.totalorder %s2023_s2, %s2019_s24 }
 0x145   : > { %p2021_p12 = pnand %p2020_p11, %p2186_p4 }
 0x146   : > { %p2026_p2 = por %p2025_p1, %p2024_p0 }
 0x147   : > { %p2022_p13 = pneg %p2021_p12 }
 0x149   : > { %p2027_p3 = pnand %p2026_p2, %p2022_p13 }
 0x14b   : > { %2030 = shalt.err (!%p2027_p3)
}
 0x14c   : > { %1886 = dma.vmem_to_hbm [thread:$0]  (%p2186_p4), %s2569_s3, 512, %s2575_s16, %s1398_s18, %s2681_s0, %s2681_s0, %s2091_s27  }
 0x14d PF: > { %p1900_p5 = scmp.ge.s32.totalorder %s2085_s14, 2  ;;  %s1466_s26 = sand.u32 1, %s2065_s30  }
 0x14e   : > { %s1467_s20 = scalar_lea.sflag [#allocation3], %s1466_s26 }
 0x14f   : > { %p1891_p6 = pnand %p1900_p5, %p2195_p8 }
 0x151   : > { %p1892_p7 = pneg %p1891_p6 }
 0x153   : > { %2056 = dma.done.wait (%p1892_p7), %s1467_s20, 512  }
 0x154   : > { %2058 = vsyncadd (%p1892_p7), %s1467_s20, 4294966784  ;;  %s2682_s19 = sadd.s32 4294967294, %s2085_s14  }
 0x155   : > { %s1475_s23 = sand.u32 1, %s2682_s19  }
 0x156   : > { %s1476_s28 = scalar_lea.sflag [#allocation5], %s1475_s23 }
 0x157   : > { %2060 = dma.done.wait (%p1892_p7), %s1476_s28, 1024  }
 0x158   : > { %2062 = vsyncadd (%p1892_p7), %s1476_s28, 4294966272  ;;  %s26_s14 = sadd.s32 1, %s2085_s14   ;;  %s2683_s30 = smov %s2069_s10 }
 0x159   : > { %p23_p4 = scmp.ge.s32.totalorder %s26_s14, 4   ;;  %s2684_s10 = smov %s2073_s11 }
 0x15a   : > { %s2685_s11 = smov %s2201_s22  ;;  %s2686_s12 = smov %s2081_s13 }
 0x15b   : > { %s2687_s13 = smov %s2689_s17  ;;  %25 = sbr.rel (!%p23_p4) target bundleno = 11 (0xb), region = 142 }
 0x160   :  { %1490 = vsyncpa [#allocation3], 1 }
 0x161   :  { %1492 = vsyncpa [#allocation3 + $0x1], 1 }
 0x162   :  { %1493 = vsyncpa [#allocation5], 1 }
 0x163   :  { %1495 = vsyncpa [#allocation5 + $0x1], 1 }

</bundles_post_ra>
